<compile_context>
chip_gen: v7x
topology: tpu7x:2x2x1
jax: 0.10.0
libtpu: 0.0.40
codegen_flags: <defaults>
</compile_context>

<pallas_src>
import jax
import jax.numpy as jnp
from jax import lax
from jax.experimental import pallas as pl
from jax.experimental.pallas import tpu as pltpu

LANE = 128            # vreg lane width
MAX_TILE_ROWS = 2048  # per-step blocks: in (2048,256) f32 + out (2048,128) f32 = 3 MiB


def addnet_kernel(w_ref, b_ref, x_ref, o_ref):
    # w_ref: (1, 2) f32 in SMEM, b_ref: (1,) f32 in SMEM
    # x_ref: (tile_rows, 2*LANE) f32, interleaved [x0, x1, x0, x1, ...] along lanes
    # o_ref: (tile_rows, LANE) f32; lane l of row r = sample r*128 + l
    w0 = w_ref[0, 0]
    w1 = w_ref[0, 1]
    b = b_ref[0]

    # (2*LANE, LANE) de-interleave + weight matrix: column l picks lanes 2l, 2l+1.
    #   W[k, l] = w0 if k == 2l ; w1 if k == 2l+1 ; 0 otherwise
    k = lax.broadcasted_iota(jnp.int32, (2 * LANE, LANE), 0)
    l = lax.broadcasted_iota(jnp.int32, (2 * LANE, LANE), 1)
    wmat = jnp.where(k == 2 * l, w0, jnp.where(k == 2 * l + 1, w1, 0.0))
    wmat = wmat.astype(jnp.float32)

    # One MXU matmul performs de-interleave + x0*w0 + x1*w1 (f32-exact at HIGHEST).
    y = jnp.dot(x_ref[...], wmat,
                preferred_element_type=jnp.float32,
                precision=lax.Precision.HIGHEST)
    o_ref[...] = jnp.maximum(y + b, 0.0).astype(o_ref.dtype)


def add_network(x, weight, bias):
    """x: (B, 2) f32, weight: (1, 2) f32, bias: (1,) f32 -> (B, 1) f32."""
    B = x.shape[0]

    # Lane-dense view of x in its natural layout: (rows, 256).
    # Zero-copy when B is already a multiple of 128; otherwise pad once.
    rows = -(-B // LANE)                  # ceil(B / 128)
    b_pad = rows * LANE
    pad = b_pad - B
    x_p = jnp.pad(x, ((0, pad), (0, 0))) if pad else x
    x2d = x_p.reshape(rows, 2 * LANE)     # zero-copy reshape of contiguous (B, 2)

    # Tile size: large blocks, but guarantee >= 2 grid steps when there is enough
    # work so the "parallel" axis shards across both TensorCores on v7x.
    if rows >= 16:
        half = -(-rows // 2)
        tile_rows = min(MAX_TILE_ROWS, ((half + 7) // 8) * 8)
    else:
        tile_rows = rows                  # single block; equals full dim => legal
    grid = (pl.cdiv(rows, tile_rows),)

    out2d = pl.pallas_call(
        addnet_kernel,
        out_shape=jax.ShapeDtypeStruct((rows, LANE), x.dtype),
        grid=grid,
        in_specs=[
            # Tiny parameters -> SMEM scalars.
            pl.BlockSpec(memory_space=pltpu.MemorySpace.SMEM),   # weight (1, 2)
            pl.BlockSpec(memory_space=pltpu.MemorySpace.SMEM),   # bias   (1,)
            # Single streaming input in its natural layout, double-buffered.
            pl.BlockSpec((tile_rows, 2 * LANE), lambda i: (i, 0)),
        ],
        out_specs=pl.BlockSpec((tile_rows, LANE), lambda i: (i, 0)),
        compiler_params=pltpu.CompilerParams(
            dimension_semantics=("parallel",),   # both TCs on v7x; no-op on v5e/v6e
        ),
    )(weight, bias, x2d)

    # Back to the PyTorch layout (B, 1). The reshape is zero-copy; the slice only
    # runs when the batch was padded (drops the padded tail).
    out = out2d.reshape(b_pad, 1)
    return out if pad == 0 else out[:B]


if __name__ == "__main__":
    # Deterministic parameters exactly as in the PyTorch __init__.
    weight = jnp.array([[1.0, 1.0]], dtype=jnp.float32)  # (1, 2)
    bias = jnp.array([0.0], dtype=jnp.float32)           # (1,)

    # Small deterministic input: batch=8, in_features=2.
    key = jax.random.PRNGKey(0)
    x = jax.random.normal(key, (8, 2), dtype=jnp.float32)

    out = add_network(x, weight, bias)
    out = jax.block_until_ready(out)

    # Exact elementwise reference: relu(x0*w0 + x1*w1 + b)
    ref = jnp.maximum(x[:, 0:1] * weight[0, 0] + x[:, 1:2] * weight[0, 1] + bias[0], 0.0)
    assert out.shape == (8, 1), out.shape
    assert jnp.allclose(out, ref, atol=1e-6), (out, ref)

    print("KERNEL_OK")
</pallas_src>

<mosaic_0001>
module attributes {stable_mosaic.version = 11 : i64} {
  func.func @addnet_kernel(%arg0: i32, %arg1: memref<1x2xf32, #tpu.memory_space<smem>>, %arg2: memref<1xf32, #tpu.memory_space<smem>>, %arg3: memref<1x256xf32, #tpu.memory_space<vmem>>, %arg4: memref<1x128xf32, #tpu.memory_space<vmem>>) attributes {dimension_semantics = [#tpu.dimension_semantics<parallel>], iteration_bounds = array<i64: 1>, scalar_prefetch = 0 : i64, scratch_operands = 0 : i64, tpu.core_type = #tpu.core_type<tc>, window_params = [{transform_indices = @transform_0, window_bounds = array<i64: 1, 2>}, {transform_indices = @transform_1, window_bounds = array<i64: 1>}, {transform_indices = @transform_2, window_bounds = array<i64: 1, 256>}, {transform_indices = @transform_3, window_bounds = array<i64: 1, 128>}]} {
    %c0 = arith.constant 0 : index
    %c0_0 = arith.constant 0 : index
    %0 = memref.load %arg1[%c0, %c0_0] : memref<1x2xf32, #tpu.memory_space<smem>>
    %c0_1 = arith.constant 0 : index
    %c1 = arith.constant 1 : index
    %1 = memref.load %arg1[%c0_1, %c1] : memref<1x2xf32, #tpu.memory_space<smem>>
    %c0_2 = arith.constant 0 : index
    %2 = memref.load %arg2[%c0_2] : memref<1xf32, #tpu.memory_space<smem>>
    %3 = tpu.iota {dimensions = array<i32: 0>} : vector<256x128xi32>
    %4 = tpu.iota {dimensions = array<i32: 1>} : vector<256x128xi32>
    %c2_i32 = arith.constant 2 : i32
    %5 = vector.broadcast %c2_i32 : i32 to vector<256x128xi32>
    %6 = arith.muli %5, %4 : vector<256x128xi32>
    %7 = arith.cmpi eq, %3, %6 : vector<256x128xi32>
    %c2_i32_3 = arith.constant 2 : i32
    %8 = vector.broadcast %c2_i32_3 : i32 to vector<256x128xi32>
    %9 = arith.muli %8, %4 : vector<256x128xi32>
    %c1_i32 = arith.constant 1 : i32
    %10 = vector.broadcast %c1_i32 : i32 to vector<256x128xi32>
    %11 = arith.addi %9, %10 : vector<256x128xi32>
    %12 = arith.cmpi eq, %3, %11 : vector<256x128xi32>
    %cst = arith.constant 0.000000e+00 : f32
    %13 = vector.broadcast %1 : f32 to vector<256x128xf32>
    %14 = vector.broadcast %cst : f32 to vector<256x128xf32>
    %15 = arith.select %12, %13, %14 : vector<256x128xi1>, vector<256x128xf32>
    %16 = vector.broadcast %0 : f32 to vector<256x128xf32>
    %17 = arith.select %7, %16, %15 : vector<256x128xi1>, vector<256x128xf32>
    %c0_4 = arith.constant 0 : index
    %c0_5 = arith.constant 0 : index
    %18 = vector.load %arg3[%c0_4, %c0_5] : memref<1x256xf32, #tpu.memory_space<vmem>>, vector<1x256xf32>
    %cst_6 = arith.constant dense<0.000000e+00> : vector<1x128xf32>
    %19 = tpu.matmul %18, %17, %cst_6 {dimension_numbers = #tpu.dot_dimension_numbers<[1], [0], [0], [1], [0, 0, 1, 1], [], []>, precision = #tpu.contract_precision<fp32>} : vector<1x256xf32>, vector<256x128xf32>, vector<1x128xf32> -> vector<1x128xf32>
    %20 = vector.broadcast %2 : f32 to vector<1x128xf32>
    %21 = arith.addf %19, %20 : vector<1x128xf32>
    %cst_7 = arith.constant 0.000000e+00 : f32
    %22 = vector.broadcast %cst_7 : f32 to vector<1x128xf32>
    %23 = arith.maximumf %21, %22 : vector<1x128xf32>
    %c0_8 = arith.constant 0 : index
    %c0_9 = arith.constant 0 : index
    %24 = vector.load %arg4[%c0_8, %c0_9] : memref<1x128xf32, #tpu.memory_space<vmem>>, vector<1x128xf32>
    tpu.vector_store %arg4[%c0_8, %c0_9], %23 {strides = array<i32>} : memref<1x128xf32, #tpu.memory_space<vmem>>, vector<1x128xf32>,
    return
  }
  func.func @transform_0(%arg0: i32) -> (i32, i32) {
    %c0_i32 = arith.constant 0 : i32
    %c0_i32_0 = arith.constant 0 : i32
    %c0_i32_1 = arith.constant 0 : i32
    return %c0_i32, %c0_i32_0 : i32, i32
  }
  func.func @transform_1(%arg0: i32) -> i32 {
    %c0_i32 = arith.constant 0 : i32
    %c0_i32_0 = arith.constant 0 : i32
    return %c0_i32 : i32
  }
  func.func @transform_2(%arg0: i32) -> (i32, i32) {
    %c0_i32 = arith.constant 0 : i32
    %c0_i32_0 = arith.constant 0 : i32
    return %arg0, %c0_i32 : i32, i32
  }
  func.func @transform_3(%arg0: i32) -> (i32, i32) {
    %c0_i32 = arith.constant 0 : i32
    %c0_i32_0 = arith.constant 0 : i32
    return %arg0, %c0_i32 : i32, i32
  }
}

</mosaic_0001>

<bundles_post_ra>
// kernel: tpu_custom_call.1
= control target key start
LH: loop header
LB: loop body
LE: loop exit
PB: predicated region body
PF: predicated region fallthrough
CT: control target
= control target key end

     0   :  { %9 = vsyncpa [#allocation5], 0  ;;  %s2160_s0 = inlined_call_operand.vmem [shape: f32[1,2], index: 0, kind: input, shape index: {}]   ;;  %s2161_s1 = inlined_call_operand.<no memory space> [shape: f32[1], index: 1, kind: input, shape index: {}]   ;;  %s2162_s2 = inlined_call_operand.vmem [shape: f32[1,256], index: 2, kind: input, shape index: {}]   ;;  %s2163_s3 = inlined_call_operand.hbm [shape: f32[1,128], index: 3, kind: output, shape index: {}]  }
   0x1   :  { %10 = vsyncpa [#allocation4], 0  ;;  %s17_s14 = sshll.u32 %s2160_s0, 4  ;;  %s18_s14 = int_to_ptr.vmem [resolvable:$true] %s17_s14 }
   0x2   :  { %s1496_s15 = scalar_lea.vmem %s18_s14, 16  ;;  %p1501_p1 = scmp.lt.s32.totalorder %s18_s14, %s18_s14 }
   0x3   :  { %p1497_p0 = scmp.ne.s32.totalorder %s18_s14, %s1496_s15  ;;  %p1502_p2 = scmp.lt.s32.totalorder %s1496_s15, %s1496_s15 }
   0x5   :  { %p1503_p3 = por %p1502_p2, %p1501_p1 }
   0x7   :  { %p1504_p4 = pnand %p1503_p3, %p1497_p0 }
   0x9   :  { %1507 = shalt.err (!%p1504_p4)
}
   0xa   :  { %s1534_s16 = smov [#allocation3]  }
   0xb   :  { %20 = dma.vmem_to_smem %s18_s14, 16, %s1534_s16, [#allocation5]  }
   0xc   :  { %1530 = dma.done.wait [#allocation5], 16  }
   0xd   :  { %1531 = vsyncadd [#allocation5], 4294967280 }
   0xe   :  { %28 = sfence }
   0xf   :  { %s29_s17 = sld [smem:[#allocation3]]  ;;  %s1091_s18 = sld [smem:[#allocation3 + $0x1]]  ;;  %v32_v0 = vlaneseq }
  0x11   :  { %v1559_v1 = vshrl.u32 %v32_v0, 7  ;;  %v66_v2 = vand.u32 127, %v32_v0 }
  0x13   :  { %v49_v3 = vadd.s32 128, %v1559_v1  ;;  %v50_v4 = vadd.s32 136, %v1559_v1  ;;  %v1563_v5 = vmul.u32 2, %v66_v2  ;;  %v34_v6 = vadd.s32 8, %v1559_v1 }
  0x14   :  { %v51_v7 = vadd.s32 144, %v1559_v1  ;;  %v52_v8 = vadd.s32 152, %v1559_v1  ;;  %v35_v9 = vadd.s32 16, %v1559_v1  ;;  %v36_v12 = vadd.s32 24, %v1559_v1 }
  0x15   :  { %vm84_vm0 = vcmp.eq.s32.totalorder %v49_v3, %v1563_v5  ;;  %v1571_v10 = vadd.s32 1, %v1563_v5  ;;  %v1573_v11 = vstv %s1091_s18  ;;  %vm85_vm1 = vcmp.eq.s32.totalorder %v50_v4, %v1563_v5 }
  0x16   :  { %v1577_v13 = vstv %s29_s17  ;;  %vm68_vm2 = vcmp.eq.s32.totalorder %v1559_v1, %v1563_v5  ;;  %vm69_vm3 = vcmp.eq.s32.totalorder %v34_v6, %v1563_v5  ;;  %vm86_vm8 = vcmp.eq.s32.totalorder %v51_v7, %v1563_v5 }
  0x17   :  { %vm117_vm4 = vcmp.eq.s32.totalorder %v49_v3, %v1571_v10  ;;  %vm118_vm5 = vcmp.eq.s32.totalorder %v50_v4, %v1571_v10  ;;  %vm101_vm6 = vcmp.eq.s32.totalorder %v1559_v1, %v1571_v10  ;;  %vm102_vm7 = vcmp.eq.s32.totalorder %v34_v6, %v1571_v10 }
  0x18   :  { %v150_v14 = vsel %vm117_vm4, %v1573_v11, 0.0  ;;  %v151_v15 = vsel %vm118_vm5, %v1573_v11, 0.0  ;;  %v134_v16 = vsel %vm101_vm6, %v1573_v11, 0.0  ;;  %v135_v17 = vsel %vm102_vm7, %v1573_v11, 0.0 }
  0x19   :  { %v183_v18 = vsel %vm84_vm0, %v1577_v13, %v150_v14  ;;  %v184_v19 = vsel %vm85_vm1, %v1577_v13, %v151_v15  ;;  %v167_v20 = vsel %vm68_vm2, %v1577_v13, %v134_v16  ;;  %v168_v21 = vsel %vm69_vm3, %v1577_v13, %v135_v17 }
  0x1a   :  { %v261_v22 = vand.u32 4294901760, %v183_v18  ;;  %v264_v23 = vand.u32 4294901760, %v184_v19  ;;  %v213_v24 = vand.u32 4294901760, %v167_v20  ;;  %v216_v25 = vand.u32 4294901760, %v168_v21 }
  0x1b   :  { %vm87_vm9 = vcmp.eq.s32.totalorder %v52_v8, %v1563_v5  ;;  %vm119_vm10 = vcmp.eq.s32.totalorder %v51_v7, %v1571_v10  ;;  %vm120_vm11 = vcmp.eq.s32.totalorder %v52_v8, %v1571_v10  ;;  %vm70_vm12 = vcmp.eq.s32.totalorder %v35_v9, %v1563_v5 }
  0x1c   :  { %v1601_v26 = vpack.c.bf16 %v264_v23, %v261_v22  ;;  %v1603_v27 = vpack.c.bf16 %v216_v25, %v213_v24  ;;  %v1605_v28 = vsub.f32 %v167_v20, %v213_v24  ;;  %v152_v29 = vsel %vm119_vm10, %v1573_v11, 0.0 }
  0x1d   :  { %v153_v30 = vsel %vm120_vm11, %v1573_v11, 0.0  ;;  %vm71_vm13 = vcmp.eq.s32.totalorder %v36_v12, %v1563_v5  ;;  %vm103_vm14 = vcmp.eq.s32.totalorder %v35_v9, %v1571_v10  ;;  %v185_v31 = vsel %vm86_vm8, %v1577_v13, %v152_v29 }
  0x1e   :  { %1303 = vmatprep.subr.bf16.mxu0 %v1601_v26  ;;  %v186_v32 = vsel %vm87_vm9, %v1577_v13, %v153_v30  ;;  %vm104_vm15 = vcmp.eq.s32.totalorder %v36_v12, %v1571_v10  ;;  %v136_v33 = vsel %vm103_vm14, %v1573_v11, 0.0  ;;  %v267_v34 = vand.u32 4294901760, %v185_v31 }
  0x1f   :  { %1305 = vmatpush3.bf16.msra.mxu0 %v1603_v27  ;;  %v270_v35 = vand.u32 4294901760, %v186_v32  ;;  %v137_v36 = vsel %vm104_vm15, %v1573_v11, 0.0  ;;  %v169_v37 = vsel %vm70_vm12, %v1577_v13, %v136_v33  ;;  %v53_v40 = vadd.s32 160, %v1559_v1 }
  0x20   :  { %v170_v38 = vsel %vm71_vm13, %v1577_v13, %v137_v36  ;;  %v219_v39 = vand.u32 4294901760, %v169_v37  ;;  %v54_v41 = vadd.s32 168, %v1559_v1  ;;  %v1623_v42 = vsub.f32 %v168_v21, %v216_v25 }
  0x21   :  { %v1625_v43 = vpack.c.bf16 %v270_v35, %v267_v34  ;;  %v1627_v44 = vsub.f32 %v185_v31, %v267_v34  ;;  %v222_v45 = vand.u32 4294901760, %v170_v38  ;;  %v1629_v46 = vsub.f32 %v186_v32, %v270_v35 }
  0x22   :  { %vm88_vm0 = vcmp.eq.s32.totalorder %v53_v40, %v1563_v5  ;;  %vm89_vm1 = vcmp.eq.s32.totalorder %v54_v41, %v1563_v5  ;;  %vm121_vm2 = vcmp.eq.s32.totalorder %v53_v40, %v1571_v10  ;;  %v1637_v48 = vsub.f32 %v169_v37, %v219_v39 }
  0x23   :  { %2212 = vst [vmem:[#allocation9_spill] sm:$0xff] %v1627_v44  ;;  %2213 = vst [vmem:[#allocation10_spill] sm:$0xff] %v1629_v46  ;;  %1307 = vmatprep.subr.bf16.mxu0 %v1625_v43  ;;  %v1635_v47 = vpack.c.bf16 %v222_v45, %v219_v39  ;;  %vm122_vm3 = vcmp.eq.s32.totalorder %v54_v41, %v1571_v10  ;;  %v154_v49 = vsel %vm121_vm2, %v1573_v11, 0.0  ;;  %v37_v56 = vadd.s32 32, %v1559_v1 }
  0x24   :  { %v155_v50 = vsel %vm122_vm3, %v1573_v11, 0.0  ;;  %v187_v51 = vsel %vm88_vm0, %v1577_v13, %v154_v49  ;;  %v1643_v52 = vsub.f32 %v183_v18, %v261_v22  ;;  %v1645_v53 = vsub.f32 %v184_v19, %v264_v23 }
  0x25   :  { %1309 = vmatpush3.bf16.msra.mxu0 %v1635_v47  ;;  %v188_v54 = vsel %vm89_vm1, %v1577_v13, %v155_v50  ;;  %v273_v55 = vand.u32 4294901760, %v187_v51  ;;  %v38_v57 = vadd.s32 40, %v1559_v1  ;;  %v2167_v61 = vand.u32 4294901760, %v1605_v28 }
  0x26   :  { %2214 = vst [vmem:[#allocation11_spill] sm:$0xff] %v1643_v52  ;;  %2215 = vst [vmem:[#allocation12_spill] sm:$0xff] %v1645_v53  ;;  %v276_v58 = vand.u32 4294901760, %v188_v54  ;;  %v2169_v59 = vand.u32 4294901760, %v1643_v52  ;;  %v2168_v60 = vand.u32 4294901760, %v1645_v53  ;;  %v1654_v62 = vsub.f32 %v170_v38, %v222_v45 }
  0x27   :  { %v1656_v63 = vsub.f32 %v187_v51, %v273_v55  ;;  %vm72_vm4 = vcmp.eq.s32.totalorder %v37_v56, %v1563_v5  ;;  %vm105_vm5 = vcmp.eq.s32.totalorder %v37_v56, %v1571_v10  ;;  %vm73_vm6 = vcmp.eq.s32.totalorder %v38_v57, %v1563_v5 }
  0x28   :  { %v1660_v0 = vpack.c.bf16 %v276_v58, %v273_v55  ;;  %v440_v2 = vsub.f32 %v1643_v52, %v2169_v59  ;;  %v447_v3 = vsub.f32 %v1645_v53, %v2168_v60  ;;  %vm106_vm7 = vcmp.eq.s32.totalorder %v38_v57, %v1571_v10 }
  0x29   :  { %v138_v4 = vsel %vm105_vm5, %v1573_v11, 0.0  ;;  %v328_v6 = vsub.f32 %v1605_v28, %v2167_v61  ;;  %v2166_v7 = vand.u32 4294901760, %v1623_v42  ;;  %v139_v12 = vsel %vm106_vm7, %v1573_v11, 0.0 }
  0x2a   :  { %1311 = vmatprep.subr.bf16.mxu0 %v1660_v0  ;;  %v441_v8 = vand.u32 4294901760, %v440_v2  ;;  %v448_v9 = vand.u32 4294901760, %v447_v3  ;;  %v171_v14 = vsel %vm72_vm4, %v1577_v13, %v138_v4  ;;  %v172_v15 = vsel %vm73_vm6, %v1577_v13, %v139_v12 }
  0x2b   :  { %v225_v16 = vand.u32 4294901760, %v171_v14  ;;  %v329_v17 = vand.u32 4294901760, %v328_v6  ;;  %v335_v18 = vsub.f32 %v1623_v42, %v2166_v7  ;;  %v228_v20 = vand.u32 4294901760, %v172_v15 }
  0x2c   :  { %v1334_v19 = vpack.c.bf16 %v448_v9, %v441_v8  ;;  %v55_v21 = vadd.s32 176, %v1559_v1  ;;  %v56_v22 = vadd.s32 184, %v1559_v1  ;;  %v1684_v23 = vsub.f32 %v188_v54, %v276_v58 }
  0x2d   :  { %v336_v24 = vand.u32 4294901760, %v335_v18  ;;  %v2165_v25 = vand.u32 4294901760, %v1627_v44  ;;  %v2164_v29 = vand.u32 4294901760, %v1629_v46  ;;  %v1688_v30 = vpack.c.bf16 %v228_v20, %v225_v16 }
  0x2e   :  { %1335 = vmatprep.subr.bf16.mxu1 %v1334_v19  ;;  %v1690_v31 = vsub.f32 %v171_v14, %v225_v16  ;;  %vm90_vm8 = vcmp.eq.s32.totalorder %v55_v21, %v1563_v5  ;;  %vm91_vm9 = vcmp.eq.s32.totalorder %v56_v22, %v1563_v5  ;;  %vm123_vm10 = vcmp.eq.s32.totalorder %v55_v21, %v1571_v10 }
  0x2f   :  { %v1336_v32 = vpack.c.bf16 %v336_v24, %v329_v17  ;;  %vm124_vm11 = vcmp.eq.s32.totalorder %v56_v22, %v1571_v10  ;;  %v454_v33 = vsub.f32 %v1627_v44, %v2165_v25  ;;  %1313 = vmatpush3.bf16.msra.mxu0 %v1688_v30  ;;  %v156_v34 = vsel %vm123_vm10, %v1573_v11, 0.0 }
  0x30   :  { %v157_v35 = vsel %vm124_vm11, %v1573_v11, 0.0  ;;  %v461_v36 = vsub.f32 %v1629_v46, %v2164_v29  ;;  %v39_v37 = vadd.s32 48, %v1559_v1  ;;  %v189_v38 = vsel %vm90_vm8, %v1577_v13, %v156_v34 }
  0x31   :  { %1337 = vmatpush3.bf16.msra.mxu1 %v1336_v32  ;;  %v190_v39 = vsel %vm91_vm9, %v1577_v13, %v157_v35  ;;  %v455_v40 = vand.u32 4294901760, %v454_v33  ;;  %v40_v41 = vadd.s32 56, %v1559_v1  ;;  %v279_v45 = vand.u32 4294901760, %v189_v38 }
  0x32   :  { %v282_v49 = vand.u32 4294901760, %v190_v39  ;;  %v462_v50 = vand.u32 4294901760, %v461_v36  ;;  %vm74_vm12 = vcmp.eq.s32.totalorder %v39_v37, %v1563_v5  ;;  %vm107_vm14 = vcmp.eq.s32.totalorder %v39_v37, %v1571_v10 }
  0x33   :  { %vm75_vm13 = vcmp.eq.s32.totalorder %v40_v41, %v1563_v5  ;;  %vm108_vm15 = vcmp.eq.s32.totalorder %v40_v41, %v1571_v10  ;;  %v2184_v51 = vand.u32 4294901760, %v1637_v48  ;;  %v1714_v54 = vsub.f32 %v172_v15, %v228_v20 }
  0x34   :  { %v1716_v55 = vpack.c.bf16 %v282_v49, %v279_v45  ;;  %v1718_v56 = vsub.f32 %v189_v38, %v279_v45  ;;  %v1338_v57 = vpack.c.bf16 %v462_v50, %v455_v40  ;;  %v140_v58 = vsel %vm107_vm14, %v1573_v11, 0.0 }
  0x35   :  { %v141_v2 = vsel %vm108_vm15, %v1573_v11, 0.0  ;;  %v342_v3 = vsub.f32 %v1637_v48, %v2184_v51  ;;  %v2182_v4 = vand.u32 4294901760, %v1654_v62  ;;  %v173_v6 = vsel %vm74_vm12, %v1577_v13, %v140_v58 }
  0x36   :  { %1315 = vmatprep.subr.bf16.mxu0 %v1716_v55  ;;  %1339 = vmatprep.subr.bf16.mxu1 %v1338_v57  ;;  %v174_v8 = vsel %vm75_vm13, %v1577_v13, %v141_v2  ;;  %v57_v9 = vadd.s32 192, %v1559_v1  ;;  %v58_v12 = vadd.s32 200, %v1559_v1  ;;  %v231_v14 = vand.u32 4294901760, %v173_v6 }
  0x37   :  { %v234_v15 = vand.u32 4294901760, %v174_v8  ;;  %v343_v16 = vand.u32 4294901760, %v342_v3  ;;  %v349_v17 = vsub.f32 %v1654_v62, %v2182_v4  ;;  %v1738_v18 = vsub.f32 %v190_v39, %v282_v49 }
  0x38   :  { %vm92_vm0 = vcmp.eq.s32.totalorder %v57_v9, %v1563_v5  ;;  %vm93_vm1 = vcmp.eq.s32.totalorder %v58_v12, %v1563_v5  ;;  %vm125_vm2 = vcmp.eq.s32.totalorder %v57_v9, %v1571_v10  ;;  %vm126_vm3 = vcmp.eq.s32.totalorder %v58_v12, %v1571_v10 }
  0x39   :  { %v1740_v19 = vpack.c.bf16 %v234_v15, %v231_v14  ;;  %v1742_v20 = vsub.f32 %v173_v6, %v231_v14  ;;  %v350_v21 = vand.u32 4294901760, %v349_v17  ;;  %v158_v22 = vsel %vm125_vm2, %v1573_v11, 0.0 }
  0x3a   :  { %v159_v24 = vsel %vm126_vm3, %v1573_v11, 0.0  ;;  %v2181_v32 = vand.u32 4294901760, %v1656_v63  ;;  %v2180_v33 = vand.u32 4294901760, %v1684_v23  ;;  %v191_v35 = vsel %vm92_vm0, %v1577_v13, %v158_v22 }
  0x3b   :  { %1317 = vmatpush3.bf16.msra.mxu0 %v1740_v19  ;;  %v1340_v34 = vpack.c.bf16 %v350_v21, %v343_v16  ;;  %v192_v36 = vsel %vm93_vm1, %v1577_v13, %v159_v24  ;;  %v41_v37 = vadd.s32 64, %v1559_v1  ;;  %v285_v38 = vand.u32 4294901760, %v191_v35 }
  0x3c   :  { %v288_v39 = vand.u32 4294901760, %v192_v36  ;;  %v468_v40 = vsub.f32 %v1656_v63, %v2181_v32  ;;  %v475_v41 = vsub.f32 %v1684_v23, %v2180_v33  ;;  %v42_v45 = vadd.s32 72, %v1559_v1 }
  0x3d   :  { %1341 = vmatpush3.bf16.msra.mxu1 %v1340_v34  ;;  %vm76_vm4 = vcmp.eq.s32.totalorder %v41_v37, %v1563_v5  ;;  %vm109_vm5 = vcmp.eq.s32.totalorder %v41_v37, %v1571_v10  ;;  %v2177_v49 = vand.u32 4294901760, %v1690_v31  ;;  %v1762_v50 = vsub.f32 %v174_v8, %v234_v15 }
  0x3e   :  { %v1764_v57 = vpack.c.bf16 %v288_v39, %v285_v38  ;;  %v1766_v58 = vsub.f32 %v191_v35, %v285_v38  ;;  %v469_v2 = vand.u32 4294901760, %v468_v40  ;;  %v476_v3 = vand.u32 4294901760, %v475_v41 }
  0x3f   :  { %vm77_vm6 = vcmp.eq.s32.totalorder %v42_v45, %v1563_v5  ;;  %vm110_vm7 = vcmp.eq.s32.totalorder %v42_v45, %v1571_v10  ;;  %v142_v6 = vsel %vm109_vm5, %v1573_v11, 0.0  ;;  %v356_v8 = vsub.f32 %v1690_v31, %v2177_v49 }
  0x40   :  { %1319 = vmatprep.subr.bf16.mxu0 %v1764_v57  ;;  %v143_v9 = vsel %vm110_vm7, %v1573_v11, 0.0  ;;  %v175_v12 = vsel %vm76_vm4, %v1577_v13, %v142_v6  ;;  %v2176_v14 = vand.u32 4294901760, %v1714_v54  ;;  %v1342_v15 = vpack.c.bf16 %v476_v3, %v469_v2 }
  0x41   :  { %v176_v16 = vsel %vm77_vm6, %v1577_v13, %v143_v9  ;;  %v237_v17 = vand.u32 4294901760, %v175_v12  ;;  %v59_v21 = vadd.s32 208, %v1559_v1  ;;  %v357_v24 = vand.u32 4294901760, %v356_v8 }
  0x42   :  { %v240_v22 = vand.u32 4294901760, %v176_v16  ;;  %v363_v34 = vsub.f32 %v1714_v54, %v2176_v14  ;;  %v60_v35 = vadd.s32 216, %v1559_v1  ;;  %v1784_v37 = vsub.f32 %v192_v36, %v288_v39  ;;  %1343 = vmatprep.subr.bf16.mxu1 %v1342_v15 }
  0x43   :  { %vm94_vm8 = vcmp.eq.s32.totalorder %v59_v21, %v1563_v5  ;;  %vm127_vm9 = vcmp.eq.s32.totalorder %v59_v21, %v1571_v10  ;;  %v2174_v38 = vand.u32 4294901760, %v1718_v56  ;;  %v1791_v41 = vsub.f32 %v175_v12, %v237_v17 }
  0x44   :  { %v1789_v40 = vpack.c.bf16 %v240_v22, %v237_v17  ;;  %v364_v45 = vand.u32 4294901760, %v363_v34  ;;  %vm95_vm10 = vcmp.eq.s32.totalorder %v60_v35, %v1563_v5  ;;  %vm128_vm11 = vcmp.eq.s32.totalorder %v60_v35, %v1571_v10 }
  0x45   :  { %v160_v2 = vsel %vm127_vm9, %v1573_v11, 0.0  ;;  %v482_v36 = vsub.f32 %v1718_v56, %v2174_v38  ;;  %v2172_v39 = vand.u32 4294901760, %v1738_v18  ;;  %v161_v6 = vsel %vm128_vm11, %v1573_v11, 0.0 }
  0x46   :  { %1321 = vmatpush3.bf16.msra.mxu0 %v1789_v40  ;;  %v1344_v3 = vpack.c.bf16 %v364_v45, %v357_v24  ;;  %v193_v9 = vsel %vm94_vm8, %v1577_v13, %v160_v2  ;;  %v43_v12 = vadd.s32 80, %v1559_v1  ;;  %v194_v8 = vsel %vm95_vm10, %v1577_v13, %v161_v6 }
  0x47   :  { %v291_v15 = vand.u32 4294901760, %v193_v9  ;;  %v483_v17 = vand.u32 4294901760, %v482_v36  ;;  %v489_v21 = vsub.f32 %v1738_v18, %v2172_v39  ;;  %v294_v34 = vand.u32 4294901760, %v194_v8 }
  0x48   :  { %1345 = vmatpush3.bf16.msra.mxu1 %v1344_v3  ;;  %v44_v35 = vadd.s32 88, %v1559_v1  ;;  %vm78_vm12 = vcmp.eq.s32.totalorder %v43_v12, %v1563_v5  ;;  %vm111_vm13 = vcmp.eq.s32.totalorder %v43_v12, %v1571_v10  ;;  %v1811_v24 = vsub.f32 %v176_v16, %v240_v22 }
  0x49   :  { %v490_v45 = vand.u32 4294901760, %v489_v21  ;;  %v144_v2 = vsel %vm111_vm13, %v1573_v11, 0.0  ;;  %v2171_v6 = vand.u32 4294901760, %v1742_v20  ;;  %v1815_v36 = vpack.c.bf16 %v294_v34, %v291_v15 }
  0x4a   :  { %v1817_v29 = vsub.f32 %v193_v9, %v291_v15  ;;  %vm79_vm14 = vcmp.eq.s32.totalorder %v44_v35, %v1563_v5  ;;  %vm112_vm15 = vcmp.eq.s32.totalorder %v44_v35, %v1571_v10  ;;  %v177_v12 = vsel %vm78_vm12, %v1577_v13, %v144_v2 }
  0x4b   :  { %v1346_v3 = vpack.c.bf16 %v490_v45, %v483_v17  ;;  %v145_v25 = vsel %vm112_vm15, %v1573_v11, 0.0  ;;  %v370_v16 = vsub.f32 %v1742_v20, %v2171_v6  ;;  %1323 = vmatprep.subr.bf16.mxu0 %v1815_v36  ;;  %v243_v21 = vand.u32 4294901760, %v177_v12 }
  0x4c   :  { %v178_v22 = vsel %vm79_vm14, %v1577_v13, %v145_v25  ;;  %v2170_v9 = vand.u32 4294901760, %v1762_v50  ;;  %v61_v15 = vadd.s32 224, %v1559_v1  ;;  %v1830_v7 = vsub.f32 %v194_v8, %v294_v34 }
  0x4d   :  { %1347 = vmatprep.subr.bf16.mxu1 %v1346_v3  ;;  %v246_v17 = vand.u32 4294901760, %v178_v22  ;;  %v62_v35 = vadd.s32 232, %v1559_v1  ;;  %v2173_v45 = vand.u32 4294901760, %v1766_v58  ;;  %v371_v2 = vand.u32 4294901760, %v370_v16 }
  0x4e   :  { %v377_v61 = vsub.f32 %v1762_v50, %v2170_v9  ;;  %vm96_vm0 = vcmp.eq.s32.totalorder %v61_v15, %v1563_v5  ;;  %vm129_vm1 = vcmp.eq.s32.totalorder %v61_v15, %v1571_v10  ;;  %v1841_v60 = vsub.f32 %v177_v12, %v243_v21 }
  0x4f   :  { %v1839_v25 = vpack.c.bf16 %v246_v17, %v243_v21  ;;  %vm97_vm2 = vcmp.eq.s32.totalorder %v62_v35, %v1563_v5  ;;  %vm130_vm3 = vcmp.eq.s32.totalorder %v62_v35, %v1571_v10  ;;  %v162_v34 = vsel %vm129_vm1, %v1573_v11, 0.0 }
  0x50   :  { %v378_v8 = vand.u32 4294901760, %v377_v61  ;;  %v163_v3 = vsel %vm130_vm3, %v1573_v11, 0.0  ;;  %v496_v16 = vsub.f32 %v1766_v58, %v2173_v45  ;;  %v195_v15 = vsel %vm96_vm0, %v1577_v13, %v162_v34 }
  0x51   :  { %2216 = vst [vmem:[#allocation13_spill] sm:$0xff] %v1839_v25  ;;  %1325 = vmatpush3.bf16.msra.mxu0 %v1839_v25  ;;  %v196_v12 = vsel %vm97_vm2, %v1577_v13, %v163_v3  ;;  %v2175_v21 = vand.u32 4294901760, %v1784_v37  ;;  %v45_v59 = vadd.s32 96, %v1559_v1  ;;  %v297_v61 = vand.u32 4294901760, %v195_v15 }
  0x52   :  { %v1348_v35 = vpack.c.bf16 %v378_v8, %v371_v2  ;;  %v300_v9 = vand.u32 4294901760, %v196_v12  ;;  %v497_v6 = vand.u32 4294901760, %v496_v16  ;;  %v46_v45 = vadd.s32 104, %v1559_v1 }
  0x53   :  { %v503_v39 = vsub.f32 %v1784_v37, %v2175_v21  ;;  %vm80_vm4 = vcmp.eq.s32.totalorder %v45_v59, %v1563_v5  ;;  %vm113_vm5 = vcmp.eq.s32.totalorder %v45_v59, %v1571_v10  ;;  %v1861_v34 = vsub.f32 %v178_v22, %v246_v17 }
  0x54   :  { %1349 = vmatpush3.bf16.msra.mxu1 %v1348_v35  ;;  %v1863_v3 = vpack.c.bf16 %v300_v9, %v297_v61  ;;  %v1865_v38 = vsub.f32 %v195_v15, %v297_v61  ;;  %v146_v2 = vsel %vm113_vm5, %v1573_v11, 0.0  ;;  %vm81_vm6 = vcmp.eq.s32.totalorder %v46_v45, %v1563_v5 }
  0x55   :  { %v504_v8 = vand.u32 4294901760, %v503_v39  ;;  %vm114_vm7 = vcmp.eq.s32.totalorder %v46_v45, %v1571_v10  ;;  %v179_v16 = vsel %vm80_vm4, %v1577_v13, %v146_v2  ;;  %v2178_v17 = vand.u32 4294901760, %v1791_v41 }
  0x56   :  { %2217 = vst [vmem:[#allocation14_spill] sm:$0xff] %v1863_v3  ;;  %1327 = vmatprep.subr.bf16.mxu0 %v1863_v3  ;;  %v147_v59 = vsel %vm114_vm7, %v1573_v11, 0.0  ;;  %v249_v22 = vand.u32 4294901760, %v179_v16  ;;  %v2179_v35 = vand.u32 4294901760, %v1811_v24  ;;  %v63_v39 = vadd.s32 240, %v1559_v1 }
  0x57   :  { %v1350_v15 = vpack.c.bf16 %v504_v8, %v497_v6  ;;  %v180_v61 = vsel %vm81_vm6, %v1577_v13, %v147_v59  ;;  %v64_v21 = vadd.s32 248, %v1559_v1  ;;  %v1878_v14 = vsub.f32 %v196_v12, %v300_v9 }
  0x58   :  { %v252_v45 = vand.u32 4294901760, %v180_v61  ;;  %v384_v2 = vsub.f32 %v1791_v41, %v2178_v17  ;;  %v391_v49 = vsub.f32 %v1811_v24, %v2179_v35  ;;  %vm98_vm8 = vcmp.eq.s32.totalorder %v63_v39, %v1563_v5 }
  0x59   :  { %1351 = vmatprep.subr.bf16.mxu1 %v1350_v15  ;;  %vm99_vm9 = vcmp.eq.s32.totalorder %v64_v21, %v1563_v5  ;;  %vm131_vm10 = vcmp.eq.s32.totalorder %v63_v39, %v1571_v10  ;;  %vm132_vm11 = vcmp.eq.s32.totalorder %v64_v21, %v1571_v10  ;;  %v1892_v9 = vsub.f32 %v179_v16, %v249_v22 }
  0x5a   :  { %v1890_v6 = vpack.c.bf16 %v252_v45, %v249_v22  ;;  %v385_v12 = vand.u32 4294901760, %v384_v2  ;;  %v392_v8 = vand.u32 4294901760, %v391_v49  ;;  %v164_v59 = vsel %vm131_vm10, %v1573_v11, 0.0 }
  0x5b   :  { %v165_v17 = vsel %vm132_vm11, %v1573_v11, 0.0  ;;  %v2183_v15 = vand.u32 4294901760, %v1817_v29  ;;  %v2185_v35 = vand.u32 4294901760, %v1830_v7  ;;  %v197_v39 = vsel %vm98_vm8, %v1577_v13, %v164_v59 }
  0x5c   :  { %2218 = vst [vmem:[#allocation15_spill] sm:$0xff] %v1890_v6  ;;  %1329 = vmatpush3.bf16.msra.mxu0 %v1890_v6  ;;  %v1352_v33 = vpack.c.bf16 %v392_v8, %v385_v12  ;;  %v198_v21 = vsel %vm99_vm9, %v1577_v13, %v165_v17  ;;  %v47_v16 = vadd.s32 112, %v1559_v1  ;;  %v303_v22 = vand.u32 4294901760, %v197_v39 }
  0x5d   :  { %v306_v2 = vand.u32 4294901760, %v198_v21  ;;  %v510_v49 = vsub.f32 %v1817_v29, %v2183_v15  ;;  %v517_v32 = vsub.f32 %v1830_v7, %v2185_v35  ;;  %v48_v4 = vadd.s32 120, %v1559_v1 }
  0x5e   :  { %1353 = vmatpush3.bf16.msra.mxu1 %v1352_v33  ;;  %vm82_vm12 = vcmp.eq.s32.totalorder %v47_v16, %v1563_v5  ;;  %vm115_vm13 = vcmp.eq.s32.totalorder %v47_v16, %v1571_v10  ;;  %v2186_v17 = vand.u32 4294901760, %v1841_v60  ;;  %v1912_v12 = vsub.f32 %v180_v61, %v252_v45 }
  0x5f   :  { %v1914_v8 = vpack.c.bf16 %v306_v2, %v303_v22  ;;  %v1916_v59 = vsub.f32 %v197_v39, %v303_v22  ;;  %v511_v15 = vand.u32 4294901760, %v510_v49  ;;  %v518_v51 = vand.u32 4294901760, %v517_v32 }
  0x60   :  { %vm83_vm14 = vcmp.eq.s32.totalorder %v48_v4, %v1563_v5  ;;  %vm116_vm15 = vcmp.eq.s32.totalorder %v48_v4, %v1571_v10  ;;  %v148_v33 = vsel %vm115_vm13, %v1573_v11, 0.0  ;;  %v398_v61 = vsub.f32 %v1841_v60, %v2186_v17  ;;  %v199_v5 = vld [vmem:[%s2162_s2] sm:$0x3] }
  0x61   :  { %2219 = vst [vmem:[#allocation16_spill] sm:$0xff] %v1914_v8  ;;  %1331 = vmatprep.subr.bf16.mxu0 %v1914_v8  ;;  %v149_v16 = vsel %vm116_vm15, %v1573_v11, 0.0  ;;  %v181_v35 = vsel %vm82_vm12, %v1577_v13, %v148_v33  ;;  %v2195_v45 = vand.u32 4294901760, %v1861_v34  ;;  %v1354_v32 = vpack.c.bf16 %v518_v51, %v511_v15 }
  0x62   :  { %v182_v10 = vsel %vm83_vm14, %v1577_v13, %v149_v16  ;;  %v255_v4 = vand.u32 4294901760, %v181_v35  ;;  %v204_v39 = vsub.s32 0, %v1559_v1  ;;  %v399_v11 = vand.u32 4294901760, %v398_v61 }
  0x63   :  { %v258_v22 = vand.u32 4294901760, %v182_v10  ;;  %v405_v49 = vsub.f32 %v1861_v34, %v2195_v45  ;;  %v208_v33 = vsub.s32 1, %v1559_v1  ;;  %v1937_v17 = vsub.f32 %v198_v21, %v306_v2  ;;  %1355 = vmatprep.subr.bf16.mxu1 %v1354_v32 }
  0x64   :  { %v205_v8 = vrot.slane %v199_v5, %v204_v39  ;;  %v2193_v6 = vand.u32 4294901760, %v1865_v38  ;;  %v2194_v51 = vand.u32 4294901760, %v1878_v14  ;;  %v1943_v15 = vsub.f32 %v181_v35, %v255_v4 }
  0x65   :  { %v1941_v13 = vpack.c.bf16 %v258_v22, %v255_v4  ;;  %v406_v16 = vand.u32 4294901760, %v405_v49  ;;  %v209_v61 = vrot.slane %v199_v5, %v208_v33  ;;  %v1366_v2 = vpack.c.bf16 %v1645_v53, %v1643_v52 }
  0x66   :  { %v1945_v3 = vand.u32 4294901760, %v205_v8  ;;  %v524_v1 = vsub.f32 %v1865_v38, %v2193_v6  ;;  %v531_v21 = vsub.f32 %v1878_v14, %v2194_v51  ;;  %v2196_v5 = vand.u32 4294901760, %v1892_v9 }
  0x67   :  { %2220 = vst [vmem:[#allocation17_spill] sm:$0xff] %v1941_v13  ;;  %1333 = vmatpush3.bf16.msra.mxu0 %v1941_v13  ;;  %v1356_v32 = vpack.c.bf16 %v406_v16, %v399_v11  ;;  %v1956_v35 = vand.u32 4294901760, %v209_v61  ;;  %v418_v4 = vand.u32 4294901760, %v1912_v12  ;;  %v1960_v39 = vsub.f32 %v182_v10, %v258_v22 }
  0x68   :  { %v525_v49 = vand.u32 4294901760, %v524_v1  ;;  %v532_v33 = vand.u32 4294901760, %v531_v21  ;;  %1367 = vmatprep.subr.bf16.mxu0 %v1366_v2  ;;  %v1963_v6 = vsub.f32 %v205_v8, %v1945_v3  ;;  %v412_v11 = vsub.f32 %v1892_v9, %v2196_v5 }
  0x69   :  { %2221 = vst [vmem:[#allocation18_spill] sm:$0xff] %v1956_v35  ;;  %1357 = vmatpush3.bf16.msra.mxu1 %v1356_v32  ;;  %v309_v51 = vsub.f32 %v209_v61, %v1956_v35  ;;  %v419_v16 = vsub.f32 %v1912_v12, %v418_v4  ;;  %v2202_v45 = vand.u32 4294901760, %v1916_v59  ;;  %549 = vmatprep.mubr.f32.mxu1 %v1956_v35  ;;  %v2207_v1 = vand.u32 4294901760, %v1937_v17 }
  0x6a   :  { %2222 = vst [vmem:[#allocation19_spill] sm:$0xff] %v1963_v6  ;;  %v1358_v10 = vpack.c.bf16 %v532_v33, %v525_v49  ;;  %v2204_v22 = vand.u32 4294901760, %v1963_v6  ;;  %v1370_v8 = vpack.c.bf16 %v1629_v46, %v1627_v44  ;;  %v413_v61 = vand.u32 4294901760, %v412_v11 }
  0x6b   :  { %v310_v21 = vand.u32 4294901760, %v309_v51  ;;  %v420_v2 = vand.u32 4294901760, %v419_v16  ;;  %v538_v32 = vsub.f32 %v1916_v59, %v2202_v45  ;;  %v545_v49 = vsub.f32 %v1937_v17, %v2207_v1 }
  0x6c   :  { %1359 = vmatprep.subr.bf16.mxu1 %v1358_v10  ;;  %v317_v5 = vsub.f32 %v1963_v6, %v2204_v22  ;;  %v425_v33 = vand.u32 4294901760, %v1943_v15  ;;  %v432_v13 = vand.u32 4294901760, %v1960_v39  ;;  %v1372_v46 = vpack.c.bf16 %v1654_v62, %v1637_v48 }
  0x6d   :  { %v311_v35 = vsub.f32 %v309_v51, %v310_v21  ;;  %v1360_v11 = vpack.c.bf16 %v420_v2, %v413_v61  ;;  %v539_v16 = vand.u32 4294901760, %v538_v32  ;;  %v546_v10 = vand.u32 4294901760, %v545_v49 }
  0x6e   :  { %v318_v45 = vand.u32 4294901760, %v317_v5  ;;  %v426_v44 = vsub.f32 %v1943_v15, %v425_v33  ;;  %v433_v22 = vsub.f32 %v1960_v39, %v432_v13  ;;  %v1368_v1 = vpack.c.bf16 %v1623_v42, %v1605_v28 }
  0x6f   :  { %v312_v6 = vand.u32 4294901760, %v311_v35  ;;  %1361 = vmatpush3.bf16.msra.mxu1 %v1360_v11  ;;  %v1362_v53 = vpack.c.bf16 %v546_v10, %v539_v16  ;;  %v1374_v5 = vpack.c.bf16 %v1684_v23, %v1656_v63  ;;  %v2223_v35 = vand.u32 4294901760, %v1637_v48 }
  0x70   :  { %v427_v52 = vand.u32 4294901760, %v426_v44  ;;  %v434_v25 = vand.u32 4294901760, %v433_v22  ;;  %v2224_v2 = vand.u32 4294901760, %v1654_v62  ;;  %v2225_v44 = vand.u32 4294901760, %v1656_v63 }
  0x71   :  { %313 = vmatprep.mubr.f32.mxu0 %v312_v6  ;;  %1363 = vmatprep.subr.bf16.mxu1 %v1362_v53  ;;  %v2226_v6 = vand.u32 4294901760, %v1684_v23  ;;  %v2230_v48 = vand.u32 4294901760, %v1738_v18  ;;  %v2231_v62 = vand.u32 4294901760, %v1742_v20  ;;  %v2233_v23 = vand.u32 4294901760, %v1766_v58 }
  0x72   :  { %319 = vmatmul.mubr.f32.vlgmr.msra.gmra.mrb[0].mxu0 %v318_v45  ;;  %v1364_v61 = vpack.c.bf16 %v434_v25, %v427_v52  ;;  %v1436_v32 = vpack.c.bf16 %v2224_v2, %v2223_v35  ;;  %v2227_v52 = vand.u32 4294901760, %v1690_v31  ;;  %v2228_v25 = vand.u32 4294901760, %v1714_v54 }
  0x73   :  { %1369 = vmatpush3.bf16.msra.mxu0 %v1368_v1  ;;  %686 = vmatprep.mubr.f32.mxu0 %v309_v51  ;;  %v1438_v53 = vpack.c.bf16 %v2226_v6, %v2225_v44  ;;  %v2229_v51 = vand.u32 4294901760, %v1718_v56  ;;  %v2232_v1 = vand.u32 4294901760, %v1762_v50  ;;  %v2235_v11 = vand.u32 4294901760, %v1791_v41 }
  0x74   :  { %1371 = vmatprep.subr.bf16.mxu0 %v1370_v8  ;;  %1365 = vmatpush3.bf16.msra.mxu1 %v1364_v61  ;;  %v2008_v45 = vpack.c.bf16 %v2228_v25, %v2227_v52  ;;  %v2234_v8 = vand.u32 4294901760, %v1784_v37  ;;  %v2236_v16 = vand.u32 4294901760, %v1811_v24  ;;  %v2237_v61 = vand.u32 4294901760, %v1817_v29 }
  0x75   :  { %1399 = vmatprep.subr.bf16.mxu1 %v1601_v26  ;;  %v2014_v22 = vpack.c.bf16 %v2230_v48, %v2229_v51  ;;  %v2020_v63 = vpack.c.bf16 %v2232_v1, %v2231_v62  ;;  %v2238_v35 = vand.u32 4294901760, %v1830_v7  ;;  %v2239_v44 = vand.u32 4294901760, %v1841_v60 }
  0x76   :  { %v2026_v49 = vpack.c.bf16 %v2234_v8, %v2233_v23  ;;  %v2032_v10 = vpack.c.bf16 %v2236_v16, %v2235_v11  ;;  %v2240_v6 = vand.u32 4294901760, %v1861_v34  ;;  %v1376_v25 = vpack.c.bf16 %v1714_v54, %v1690_v31  ;;  %v2257_v11 = vld [vmem:[#allocation16_spill] sm:$0xff]  ;;  %v2258_v16 = vld [vmem:[#allocation19_spill] sm:$0xff] }
  0x77   :  { %v2038_v2 = vpack.c.bf16 %v2238_v35, %v2237_v61  ;;  %1373 = vmatpush3.bf16.msra.mxu0 %v1372_v46  ;;  %551 = vmatmul.mubr.f32.vlgmr.msra.gmra.mrb[0].mxu1 %v1945_v3  ;;  %v2241_v51 = vand.u32 4294901760, %v1865_v38  ;;  %v2242_v48 = vand.u32 4294901760, %v1878_v14  ;;  %v2243_v1 = vand.u32 4294901760, %v1892_v9  ;;  %v2259_v61 = vld [vmem:[#allocation18_spill] sm:$0xff] }
  0x78   :  { %v2044_v52 = vpack.c.bf16 %v2240_v6, %v2239_v44  ;;  %1375 = vmatprep.subr.bf16.mxu0 %v1374_v5  ;;  %1401 = vmatpush3.bf16.msra.mxu1 %v1603_v27  ;;  %v1378_v46 = vpack.c.bf16 %v1738_v18, %v1718_v56  ;;  %v2062_v8 = vpack.c.bf16 %v432_v13, %v425_v33 }
  0x79   :  { %v2053_v62 = vpack.c.bf16 %v2242_v48, %v2241_v51  ;;  %v2057_v23 = vpack.c.bf16 %v418_v4, %v2243_v1  ;;  %1403 = vmatprep.subr.bf16.mxu1 %v1625_v43  ;;  %793 = vmatprep.mubr.f32.mxu1 %v310_v21  ;;  %v1380_v31 = vpack.c.bf16 %v1762_v50, %v1742_v20  ;;  %v2252_v4 = vld [vmem:[#allocation15_spill] sm:$0xff]  ;;  %v2255_v21 = vld [vmem:[#allocation10_spill] sm:$0xff] }
  0x7a   :  { %v1382_v54 = vpack.c.bf16 %v1784_v37, %v1766_v58  ;;  %v1384_v56 = vpack.c.bf16 %v1811_v24, %v1791_v41  ;;  %v1386_v18 = vpack.c.bf16 %v1830_v7, %v1817_v29  ;;  %v1388_v20 = vpack.c.bf16 %v1861_v34, %v1841_v60  ;;  %v2244_v29 = vld [vmem:[#allocation13_spill] sm:$0xff]  ;;  %v2249_v34 = vld [vmem:[#allocation14_spill] sm:$0xff] }
  0x7b   :  { %1377 = vmatpush3.bf16.msra.mxu0 %v1376_v25  ;;  %v1390_v50 = vpack.c.bf16 %v1878_v14, %v1865_v38  ;;  %v1392_v58 = vpack.c.bf16 %v1912_v12, %v1892_v9  ;;  %v1394_v7 = vpack.c.bf16 %v1937_v17, %v1916_v59  ;;  %v1396_v60 = vpack.c.bf16 %v1960_v39, %v1943_v15  ;;  %v2245_v14 = vld [vmem:[#allocation11_spill] sm:$0xff]  ;;  %v2247_v38 = vld [vmem:[#allocation12_spill] sm:$0xff]  ;;  %v2253_v15 = vld [vmem:[#allocation9_spill] sm:$0xff] }
  0x7c   :  { %1379 = vmatprep.subr.bf16.mxu0 %v1378_v46  ;;  %1405 = vmatpush3.bf16.msra.mxu1 %v1635_v47  ;;  %v2246_v37 = vand.u32 4294901760, %v2245_v14  ;;  %v2248_v41 = vand.u32 4294901760, %v2247_v38  ;;  %v2250_v9 = vand.u32 4294901760, %v1605_v28  ;;  %v2251_v12 = vand.u32 4294901760, %v1623_v42  ;;  %v2260_v28 = vld [vmem:[#allocation17_spill] sm:$0xff] }
  0x7d   :  { %1407 = vmatprep.subr.bf16.mxu1 %v1660_v0  ;;  %v2254_v39 = vand.u32 4294901760, %v2253_v15  ;;  %v2256_v33 = vand.u32 4294901760, %v2255_v21  ;;  %v2261_v42 = vand.u32 4294901760, %v2258_v16 }
  0x7e   :  { %v1430_v24 = vpack.c.bf16 %v2248_v41, %v2246_v37  ;;  %v1432_v13 = vpack.c.bf16 %v2251_v12, %v2250_v9 }
  0x7f   :  { %1381 = vmatpush3.bf16.msra.mxu0 %v1380_v31  ;;  %v1434_v5 = vpack.c.bf16 %v2256_v33, %v2254_v39 }
  0x80   :  { %1383 = vmatprep.subr.bf16.mxu0 %v1382_v54  ;;  %1409 = vmatpush3.bf16.msra.mxu1 %v1688_v30 }
  0x81   :  { %1411 = vmatprep.subr.bf16.mxu1 %v1716_v55 }
  0x83   :  { %1385 = vmatpush3.bf16.msra.mxu0 %v1384_v56 }
  0x84   :  { %1387 = vmatprep.subr.bf16.mxu0 %v1386_v18  ;;  %1413 = vmatpush3.bf16.msra.mxu1 %v1740_v19 }
  0x85   :  { %1415 = vmatprep.subr.bf16.mxu1 %v1764_v57 }
  0x87   :  { %1389 = vmatpush3.bf16.msra.mxu0 %v1388_v20 }
  0x88   :  { %1391 = vmatprep.subr.bf16.mxu0 %v1390_v50  ;;  %1417 = vmatpush3.bf16.msra.mxu1 %v1789_v40 }
  0x89   :  { %1419 = vmatprep.subr.bf16.mxu1 %v1815_v36 }
  0x8b   :  { %1393 = vmatpush3.bf16.msra.mxu0 %v1392_v58 }
  0x8c   :  { %1395 = vmatprep.subr.bf16.mxu0 %v1394_v7  ;;  %1421 = vmatpush3.bf16.msra.mxu1 %v2244_v29 }
  0x8d   :  { %1423 = vmatprep.subr.bf16.mxu1 %v2249_v34 }
  0x8f   :  { %1397 = vmatpush3.bf16.msra.mxu0 %v1396_v60 }
  0x90   :  { %1431 = vmatprep.subr.bf16.mxu0 %v1430_v24  ;;  %1425 = vmatpush3.bf16.msra.mxu1 %v2252_v4 }
  0x91   :  { %1427 = vmatprep.subr.bf16.mxu1 %v2257_v11 }
  0x92   :  { %689 = vmatmul.mubr.f32.vlgmr.msra.gmra.mrb[2].mxu0 %v2258_v16 }
  0x93   :  { %1433 = vmatpush3.bf16.msra.mxu0 %v1432_v13  ;;  %963 = vmatprep.mubr.f32.mxu0 %v2259_v61 }
  0x94   :  { %1435 = vmatprep.subr.bf16.mxu0 %v1434_v5  ;;  %1429 = vmatpush3.bf16.msra.mxu1 %v2260_v28 }
  0x95   :  { %1463 = vmatprep.subr.bf16.mxu1 %v1601_v26  ;;  %v2262_v26 = vand.u32 4294901760, %v1916_v59 }
  0x97   :  { %1437 = vmatpush3.bf16.msra.mxu0 %v1436_v32  ;;  %797 = vmatmul.mubr.f32.vlgmr.msra.gmra.mrb[2].mxu1 %v2261_v42 }
  0x98   :  { %1439 = vmatprep.subr.bf16.mxu0 %v1438_v53  ;;  %1465 = vmatpush3.bf16.msra.mxu1 %v1603_v27  ;;  %v2263_v27 = vand.u32 4294901760, %v1937_v17 }
  0x99   :  { %1467 = vmatprep.subr.bf16.mxu1 %v1625_v43  ;;  %1067 = vmatprep.mubr.f32.mxu1 %v2259_v61 }
  0x9a   :  { %v1458_v43 = vpack.c.bf16 %v2263_v27, %v2262_v26 }
  0x9b   :  { %1441 = vmatpush3.bf16.msra.mxu0 %v2008_v45 }
  0x9c   :  { %1443 = vmatprep.subr.bf16.mxu0 %v2014_v22  ;;  %1469 = vmatpush3.bf16.msra.mxu1 %v1635_v47 }
  0x9d   :  { %1471 = vmatprep.subr.bf16.mxu1 %v1660_v0 }
  0x9f   :  { %1445 = vmatpush3.bf16.msra.mxu0 %v2020_v63 }
  0xa0   :  { %1447 = vmatprep.subr.bf16.mxu0 %v2026_v49  ;;  %1473 = vmatpush3.bf16.msra.mxu1 %v1688_v30  ;;  %v200_v30 = vstv %s2161_s1  ;;  %s1535_s1 = smov [#allocation6]  }
  0xa1   :  { %1475 = vmatprep.subr.bf16.mxu1 %v1716_v55  ;;  %s1082_s21 = sshll.u32 %s1535_s1, 4  ;;  %s1083_s21 = int_to_ptr.vmem [resolvable:$true] %s1082_s21 }
  0xa2   :  { %s1508_s22 = scalar_lea.vmem %s1083_s21, 16  ;;  %s1512_s23 = scalar_lea.vmem %s1083_s21, 32 }
  0xa3   :  { %1449 = vmatpush3.bf16.msra.mxu0 %v2032_v10  ;;  %p1509_p5 = scmp.ne.s32.totalorder %s1083_s21, %s1508_s22  ;;  %p1513_p6 = scmp.lt.s32.totalorder %s1083_s21, %s1083_s21 }
  0xa4   :  { %1451 = vmatprep.subr.bf16.mxu0 %v2038_v2  ;;  %1477 = vmatpush3.bf16.msra.mxu1 %v1740_v19  ;;  %p1514_p7 = scmp.lt.s32.totalorder %s1512_s23, %s1508_s22 }
  0xa5   :  { %1479 = vmatprep.subr.bf16.mxu1 %v1764_v57 }
  0xa6   :  { %p1515_p8 = por %p1514_p7, %p1513_p6 }
  0xa7   :  { %1453 = vmatpush3.bf16.msra.mxu0 %v2044_v52 }
  0xa8   :  { %1455 = vmatprep.subr.bf16.mxu0 %v2053_v62  ;;  %1481 = vmatpush3.bf16.msra.mxu1 %v1789_v40  ;;  %p1516_p9 = pnand %p1515_p8, %p1509_p5 }
  0xa9   :  { %1483 = vmatprep.subr.bf16.mxu1 %v1815_v36 }
  0xab   :  { %1457 = vmatpush3.bf16.msra.mxu0 %v2057_v23 }
  0xac   :  { %1459 = vmatprep.subr.bf16.mxu0 %v1458_v43  ;;  %1485 = vmatpush3.bf16.msra.mxu1 %v2244_v29 }
  0xad   :  { %1487 = vmatprep.subr.bf16.mxu1 %v2249_v34 }
  0xaf   :  { %1461 = vmatpush3.bf16.msra.mxu0 %v2062_v8 }
  0xb0   :  { %1489 = vmatpush3.bf16.msra.mxu1 %v2252_v4 }
  0xb1   :  { %1491 = vmatprep.subr.bf16.mxu1 %v2257_v11 }
  0xb2   :  { %965 = vmatmul.mubr.f32.vlgmr.msra.gmra.mrb[4].mxu0 %v1945_v3 }
  0xb4   :  { %1493 = vmatpush3.bf16.msra.mxu1 %v2260_v28 }
  0xb7   :  { %1069 = vmatmul.mubr.f32.vlgmr.msra.gmra.mrb[4].mxu1 %v1945_v3 }
 0x145   :  { %v1124_v47 = vpop.f32.mrb[0].mxu0 }
 0x146   :  { %v1125_v0 = vpop.f32.mrb[1].mxu0 }
 0x147   :  { %v1126_v55 = vadd.f32 %v1125_v0, %v1124_v47 }
 0x149   :  { %v321_v19 = vadd.f32 %v1126_v55, %v200_v30 }
 0x14a   :  { %v1159_v57 = vpop.f32.mrb[0].mxu1 }
 0x14b   :  { %v1160_v40 = vpop.f32.mrb[1].mxu1 }
 0x14c   :  { %v1161_v36 = vadd.f32 %v1160_v40, %v1159_v57 }
 0x14e   :  { %v553_v17 = vadd.f32 %v1161_v36, %v321_v19 }
 0x165   :  { %v1194_v59 = vpop.f32.mrb[2].mxu0 }
 0x166   :  { %v1195_v32 = vpop.f32.mrb[3].mxu0 }
 0x167   :  { %v1196_v53 = vadd.f32 %v1195_v32, %v1194_v59 }
 0x169   :  { %v691_v45 = vadd.f32 %v1196_v53, %v553_v17 }
 0x16a   :  { %v1229_v22 = vpop.f32.mrb[2].mxu1 }
 0x16b   :  { %v1230_v63 = vpop.f32.mrb[3].mxu1 }
 0x16c   :  { %v1231_v49 = vadd.f32 %v1230_v63, %v1229_v22 }
 0x16e   :  { %v799_v3 = vadd.f32 %v1231_v49, %v691_v45 }
 0x185   :  { %v1264_v10 = vpop.f32.mrb[4].mxu0 }
 0x186   :  { %v1265_v35 = vpop.f32.mrb[5].mxu0 }
 0x187   :  { %v1266_v2 = vadd.f32 %v1265_v35, %v1264_v10 }
 0x189   :  { %v967_v44 = vadd.f32 %v1266_v2, %v799_v3 }
 0x18a   :  { %v1299_v6 = vpop.f32.mrb[4].mxu1 }
 0x18b   :  { %v1300_v52 = vpop.f32.mrb[5].mxu1 }
 0x18c   :  { %v1301_v25 = vadd.f32 %v1300_v52, %v1299_v6 }
 0x18e   :  { %v1071_v51 = vadd.f32 %v1301_v25, %v967_v44 }
 0x190   :  { %v1074_v48 = vmax.f32 %v1071_v51, 0.0 }
 0x192   :  { %1075 = vst [vmem:[#allocation6] sm:$0x1] %v1074_v48 }
 0x193   :  { %1519 = shalt.err (!%p1516_p9)
}
 0x194   :  { %s1520_s26 = scalar_lea.hbm %s2163_s3, 16 }
 0x195   :  { %p1521_p10 = scmp.ne.s32.totalorder %s2163_s3, %s1520_s26  ;;  %p1524_p11 = scmp.lt.u32.totalorder %s1520_s26, %s2163_s3 }
 0x197   :  { %p1526_p12 = pnand %p1524_p11, %p1521_p10 }
 0x199   :  { %1529 = shalt.err (!%p1526_p12)
}
 0x19a   :  { %1085 = dma.vmem_to_hbm [thread:$0]  %s1083_s21, 16, %s2163_s3, [#allocation4]  }
 0x19b   :  { %1532 = dma.done.wait [#allocation4], 16  }
 0x19c   :  { %1533 = vsyncadd [#allocation4], 4294967280 }
 0x19d   :  { %1089 = vsyncpa [#allocation4], 1 }
 0x19e   :  { %1090 = vsyncpa [#allocation5], 1 }

</bundles_post_ra>
